<compile_context>
chip_gen: v6e
topology: v6e:2x2x1
jax: 0.10.0
libtpu: 0.0.40
codegen_flags: <defaults>
</compile_context>

<pallas_src>
import jax
import jax.numpy as jnp
from jax.experimental import pallas as pl
from jax.experimental.pallas import tpu as pltpu

HIDDEN = 64               # LSTM hidden size from the PyTorch module
GATE_LANES = 128          # one full vreg of lanes per packed gate group
GATE_N = 2 * GATE_LANES   # packed gate matmul width: [i|o] (128) + [g|pad] (128)


def _round_up(x, m):
    return (x + m - 1) // m * m


def _choose_bm(batch, d):
    """Rows of the batch processed per grid step.

    - Large tiles amortize the ~0.35 us fixed per-grid-step cost.
    - Capped at 1024 rows and by a ~10 MiB working-set budget so the
      double-buffered x/out blocks plus the f32 gate intermediates fit v5e's
      16 MiB default scoped VMEM (v6e/v7x have more headroom).
    - Forced to >= 2 grid steps whenever B > 8 so both v7x TensorCores get
      work and DMA/compute overlap is preserved.
    """
    if batch <= 8:
        return batch  # single full-extent block (block dim == array dim is legal)
    bytes_per_row = 4 * (2 * d + 4 * GATE_N + 16)   # x (x2 buffers) + gate chain + out
    vmem_rows = max(8, (10 * 1024 * 1024 // bytes_per_row) // 8 * 8)
    bm = min(1024, vmem_rows, _round_up(pl.cdiv(batch, 2), 8))
    return max(8, bm)


def lstm_fc_kernel(x_ref, wih_ref, b_ref, wfc_ref, bfc_ref, out_ref):
    L = GATE_LANES
    # gates: (bm, 256) = x @ W_packed + bias_packed
    #   lanes [0:64]   = i pre-activation     lanes [64:128]  = o pre-activation
    #   lanes [128:192]= g pre-activation     lanes [192:256] = 0 (exact padding)
    gates = jnp.dot(x_ref[...], wih_ref[...],
                    preferred_element_type=jnp.float32) + b_ref[...]

    io = gates[:, 0:L]          # whole-vreg slice: [i | o]
    g = gates[:, L:2 * L]       # whole-vreg slice: [g | 0]

    sig_io = 1.0 / (1.0 + jnp.exp(-io))     # one EUP pass covers both i and o
    tanh_g = jnp.tanh(g)                    # tanh(0) = 0 in the padded half

    c1 = sig_io * tanh_g                    # [sigmoid(i)*tanh(g) | 0] = [c1 | 0]
    # Bring sigmoid(o) (lanes 64..127) down to lanes 0..63; XLU lane rotation.
    sig_o = pltpu.roll(sig_io, shift=HIDDEN, axis=1)
    h1 = sig_o * jnp.tanh(c1)               # [h1 | sigmoid(i)*tanh(0) = 0]

    # fc: VPU multiply + lane reduction instead of an N=1 MXU matmul.
    out_ref[...] = (jnp.sum(h1 * wfc_ref[...], axis=1, keepdims=True)
                    + bfc_ref[0, 0])


def rnn_forward(x, w_packed, b_packed, wfc_row, b_fc):
    B, D = x.shape
    bm = _choose_bm(B, D)
    nb = pl.cdiv(B, bm)   # ragged last block handled by Pallas — no host-side pad

    return pl.pallas_call(
        lstm_fc_kernel,
        out_shape=jax.ShapeDtypeStruct((B, 1), jnp.float32),
        grid_spec=pltpu.PrefetchScalarGridSpec(
            num_scalar_prefetch=0,
            grid=(nb,),
            in_specs=[
                pl.BlockSpec((bm, D), lambda i: (i, 0)),          # x, tiled over batch
                pl.BlockSpec((D, GATE_N), lambda i: (0, 0)),      # packed W (resident)
                pl.BlockSpec((1, GATE_N), lambda i: (0, 0)),      # packed bias (resident)
                pl.BlockSpec((1, GATE_LANES), lambda i: (0, 0)),  # padded W_fc row (resident)
                pl.BlockSpec(memory_space=pltpu.MemorySpace.SMEM),  # b_fc scalar (1,1)
            ],
            out_specs=pl.BlockSpec((bm, 1), lambda i: (i, 0)),
        ),
        compiler_params=pltpu.CompilerParams(
            dimension_semantics=("parallel",),
            vmem_limit_bytes=32 * 1024 * 1024),
    )(x, w_packed, b_packed, wfc_row, b_fc)


def init_raw_params(key, input_dim, hidden=HIDDEN):
    # PyTorch LSTM/Linear default init: U(-1/sqrt(H), 1/sqrt(H)); deterministic here.
    k = 1.0 / jnp.sqrt(jnp.float32(hidden))
    ks = jax.random.split(key, 5)
    w_ih = jax.random.uniform(ks[0], (4 * hidden, input_dim), jnp.float32, -k, k)
    b_ih = jax.random.uniform(ks[1], (4 * hidden,), jnp.float32, -k, k)
    b_hh = jax.random.uniform(ks[2], (4 * hidden,), jnp.float32, -k, k)
    w_fc = jax.random.uniform(ks[3], (1, hidden), jnp.float32, -k, k)
    b_fc = jax.random.uniform(ks[4], (1,), jnp.float32, -k, k)
    return w_ih, b_ih, b_hh, w_fc, b_fc


def pack_params(w_ih, b_ih, b_hh, w_fc, b_fc, hidden=HIDDEN, lane=GATE_LANES):
    """Repack PyTorch-layout LSTM/FC weights for the kernel.

    Drops the forget gate (it multiplies c0 == 0), transposes to (D, H), and
    packs gate columns as [i | o] (one 128-lane group, one shared sigmoid) and
    [g | zeros] (second group). W_fc is zero-padded to 128 lanes.
    Requires 2 * hidden == lane (true for this module: hidden = 64).
    """
    assert 2 * hidden == lane, "packing layout assumes hidden == 64"
    bias = b_ih + b_hh
    D = w_ih.shape[1]

    def gate(idx):
        w = w_ih[idx * hidden:(idx + 1) * hidden, :].T             # (D, H)
        b = bias[idx * hidden:(idx + 1) * hidden]
        return w, b

    wi, bi = gate(0)   # input gate
    wg, bg = gate(2)   # cell (g) gate
    wo, bo = gate(3)   # output gate

    w_io = jnp.concatenate([wi, wo], axis=1)                        # (D, 128)
    w_g = jnp.pad(wg, ((0, 0), (0, lane - hidden)))                 # (D, 128)
    w_packed = jnp.concatenate([w_io, w_g], axis=1)                 # (D, 256)

    b_io = jnp.concatenate([bi, bo])
    b_g = jnp.pad(bg, (0, lane - hidden))
    b_packed = jnp.concatenate([b_io, b_g]).reshape(1, 2 * lane)    # (1, 256)

    wfc_row = jnp.pad(w_fc.reshape(1, hidden),
                      ((0, 0), (0, lane - hidden)))                 # (1, 128)
    return w_packed, b_packed, wfc_row, b_fc.reshape(1, 1)


def reference(x, w_ih, b_ih, b_hh, w_fc, b_fc, hidden=HIDDEN):
    """Pure-JAX reference of the full PyTorch forward (all 4 gates, zero state)."""
    H = hidden
    hi = jax.lax.Precision.HIGHEST
    gates = jnp.dot(x, w_ih.T, precision=hi) + b_ih + b_hh
    i_g = jax.nn.sigmoid(gates[:, 0 * H:1 * H])
    f_g = jax.nn.sigmoid(gates[:, 1 * H:2 * H])
    g_g = jnp.tanh(gates[:, 2 * H:3 * H])
    o_g = jax.nn.sigmoid(gates[:, 3 * H:4 * H])
    c1 = f_g * 0.0 + i_g * g_g
    h1 = o_g * jnp.tanh(c1)
    return jnp.dot(h1, w_fc.T, precision=hi) + b_fc


if __name__ == "__main__":
    B, D = 20, 32  # small batch / input_dim; B=20 exercises 2 grid steps + ragged tail
    key = jax.random.PRNGKey(0)
    kx, kp = jax.random.split(key)
    x = jax.random.normal(kx, (B, D), jnp.float32)

    raw = init_raw_params(kp, D)
    packed = pack_params(*raw)

    out = jax.block_until_ready(rnn_forward(x, *packed))
    ref = reference(x, *raw)

    assert out.shape == (B, 1)
    assert jnp.allclose(out, ref, atol=1e-3, rtol=1e-3), (
        f"max abs err {jnp.max(jnp.abs(out - ref))}")
    print("KERNEL_OK")
</pallas_src>

<mosaic_0001>
module attributes {stable_mosaic.version = 11 : i64} {
  func.func @lstm_fc_kernel(%arg0: i32, %arg1: memref<16x32xf32, #tpu.memory_space<vmem>>, %arg2: memref<32x256xf32, #tpu.memory_space<vmem>>, %arg3: memref<1x256xf32, #tpu.memory_space<vmem>>, %arg4: memref<1x128xf32, #tpu.memory_space<vmem>>, %arg5: memref<1x1xf32, #tpu.memory_space<smem>>, %arg6: memref<16x1xf32, #tpu.memory_space<vmem>>) attributes {dimension_semantics = [#tpu.dimension_semantics<parallel>], iteration_bounds = array<i64: 2>, scalar_prefetch = 0 : i64, scratch_operands = 0 : i64, tpu.core_type = #tpu.core_type<tc>, window_params = [{transform_indices = @transform_0, window_bounds = array<i64: 16, 32>}, {pipeline_mode = #tpu.pipeline_mode<synchronous>, transform_indices = @transform_1, window_bounds = array<i64: 32, 256>}, {pipeline_mode = #tpu.pipeline_mode<synchronous>, transform_indices = @transform_2, window_bounds = array<i64: 1, 256>}, {pipeline_mode = #tpu.pipeline_mode<synchronous>, transform_indices = @transform_3, window_bounds = array<i64: 1, 128>}, {transform_indices = @transform_4, window_bounds = array<i64: 1, 1>}, {transform_indices = @transform_5, window_bounds = array<i64: 16, 1>}]} {
    %c0 = arith.constant 0 : index
    %c0_0 = arith.constant 0 : index
    %0 = vector.load %arg1[%c0, %c0_0] : memref<16x32xf32, #tpu.memory_space<vmem>>, vector<16x32xf32>
    %c0_1 = arith.constant 0 : index
    %c0_2 = arith.constant 0 : index
    %1 = vector.load %arg2[%c0_1, %c0_2] : memref<32x256xf32, #tpu.memory_space<vmem>>, vector<32x256xf32>
    %cst = arith.constant dense<0.000000e+00> : vector<16x256xf32>
    %2 = tpu.matmul %0, %1, %cst {dimension_numbers = #tpu.dot_dimension_numbers<[1], [0], [0], [1], [0, 0, 1, 1], [], []>} : vector<16x32xf32>, vector<32x256xf32>, vector<16x256xf32> -> vector<16x256xf32>
    %c0_3 = arith.constant 0 : index
    %c0_4 = arith.constant 0 : index
    %3 = vector.load %arg3[%c0_3, %c0_4] : memref<1x256xf32, #tpu.memory_space<vmem>>, vector<1x256xf32>
    %4 = vector.broadcast %3 : vector<1x256xf32> to vector<16x256xf32>
    %5 = arith.addf %2, %4 : vector<16x256xf32>
    %6 = vector.extract_strided_slice %5 {offsets = [0, 0], sizes = [16, 128], strides = [1, 1]} : vector<16x256xf32> to vector<16x128xf32>
    %7 = vector.extract_strided_slice %5 {offsets = [0, 128], sizes = [16, 128], strides = [1, 1]} : vector<16x256xf32> to vector<16x128xf32>
    %cst_5 = arith.constant 0.000000e+00 : f32
    %8 = vector.broadcast %cst_5 : f32 to vector<16x128xf32>
    %9 = arith.subf %8, %6 : vector<16x128xf32>
    %10 = math.exp %9 : vector<16x128xf32>
    %cst_6 = arith.constant 1.000000e+00 : f32
    %11 = vector.broadcast %cst_6 : f32 to vector<16x128xf32>
    %12 = arith.addf %11, %10 : vector<16x128xf32>
    %cst_7 = arith.constant 1.000000e+00 : f32
    %13 = vector.broadcast %cst_7 : f32 to vector<16x128xf32>
    %14 = arith.divf %13, %12 : vector<16x128xf32>
    %15 = math.tanh %7 : vector<16x128xf32>
    %16 = arith.mulf %14, %15 : vector<16x128xf32>
    %c64_i32 = arith.constant 64 : i32
    %17 = tpu.dynamic_rotate %14 by %c64_i32 dim 1 : vector<16x128xf32>, i32 -> vector<16x128xf32>
    %18 = math.tanh %16 : vector<16x128xf32>
    %19 = arith.mulf %17, %18 : vector<16x128xf32>
    %c0_8 = arith.constant 0 : index
    %c0_9 = arith.constant 0 : index
    %20 = vector.load %arg4[%c0_8, %c0_9] : memref<1x128xf32, #tpu.memory_space<vmem>>, vector<1x128xf32>
    %21 = vector.broadcast %20 : vector<1x128xf32> to vector<16x128xf32>
    %22 = arith.mulf %19, %21 : vector<16x128xf32>
    %cst_10 = arith.constant dense<0.000000e+00> : vector<16xf32>
    %23 = vector.multi_reduction <add>, %22, %cst_10 [1] : vector<16x128xf32> to vector<16xf32>
    %24 = vector.shape_cast %23 : vector<16xf32> to vector<16x1xf32>
    %c0_11 = arith.constant 0 : index
    %c0_12 = arith.constant 0 : index
    %25 = memref.load %arg5[%c0_11, %c0_12] : memref<1x1xf32, #tpu.memory_space<smem>>
    %26 = vector.broadcast %25 : f32 to vector<16x1xf32>
    %27 = arith.addf %24, %26 : vector<16x1xf32>
    %c0_13 = arith.constant 0 : index
    %c0_14 = arith.constant 0 : index
    %28 = vector.load %arg6[%c0_13, %c0_14] : memref<16x1xf32, #tpu.memory_space<vmem>>, vector<16x1xf32>
    tpu.vector_store %arg6[%c0_13, %c0_14], %27 {strides = array<i32>} : memref<16x1xf32, #tpu.memory_space<vmem>>, vector<16x1xf32>,
    return
  }
  func.func @transform_0(%arg0: i32) -> (i32, i32) {
    %c0_i32 = arith.constant 0 : i32
    %c0_i32_0 = arith.constant 0 : i32
    return %arg0, %c0_i32 : i32, i32
  }
  func.func @transform_1(%arg0: i32) -> (i32, i32) {
    %c0_i32 = arith.constant 0 : i32
    %c0_i32_0 = arith.constant 0 : i32
    %c0_i32_1 = arith.constant 0 : i32
    return %c0_i32, %c0_i32_0 : i32, i32
  }
  func.func @transform_2(%arg0: i32) -> (i32, i32) {
    %c0_i32 = arith.constant 0 : i32
    %c0_i32_0 = arith.constant 0 : i32
    %c0_i32_1 = arith.constant 0 : i32
    return %c0_i32, %c0_i32_0 : i32, i32
  }
  func.func @transform_3(%arg0: i32) -> (i32, i32) {
    %c0_i32 = arith.constant 0 : i32
    %c0_i32_0 = arith.constant 0 : i32
    %c0_i32_1 = arith.constant 0 : i32
    return %c0_i32, %c0_i32_0 : i32, i32
  }
  func.func @transform_4(%arg0: i32) -> (i32, i32) {
    %c0_i32 = arith.constant 0 : i32
    %c0_i32_0 = arith.constant 0 : i32
    %c0_i32_1 = arith.constant 0 : i32
    return %c0_i32, %c0_i32_0 : i32, i32
  }
  func.func @transform_5(%arg0: i32) -> (i32, i32) {
    %c0_i32 = arith.constant 0 : i32
    %c0_i32_0 = arith.constant 0 : i32
    return %arg0, %c0_i32 : i32, i32
  }
}

</mosaic_0001>

<bundles_post_ra>
// kernel: tpu_custom_call.1
= control target key start
LH: loop header
LB: loop body
LE: loop exit
PB: predicated region body
PF: predicated region fallthrough
CT: control target
= control target key end

     0   :  { %s1212_s0 = inlined_call_operand.hbm [shape: f32[20,32], index: 0, kind: input, shape index: {}]   ;;  %s1213_s1 = inlined_call_operand.hbm [shape: f32[32,256], index: 1, kind: input, shape index: {}]   ;;  %s1214_s2 = inlined_call_operand.vmem [shape: f32[1,256], index: 2, kind: input, shape index: {}]   ;;  %s1215_s3 = inlined_call_operand.vmem [shape: f32[1,128], index: 3, kind: input, shape index: {}]   ;;  %s1216_s4 = inlined_call_operand.<no memory space> [shape: f32[1,1], index: 4, kind: input, shape index: {}]   ;;  %s1217_s5 = inlined_call_operand.vmem [shape: f32[20,1], index: 5, kind: output, shape index: {}]  }
   0x1   :  { %10 = sst [smem:[#allocation2]] %s1216_s4 }
   0x2   :  { %11 = vsyncpa [#allocation4], 0 }
   0x3   :  { %13 = vsyncpa [#allocation4 + $0x1], 0 }
   0x4   :  { %14 = vsyncpa [#allocation6], 0  ;;  %s1036_s20 = smov 0   ;;  %s1038_s21 = smov 0  }
   0x5   :  { %s1040_s22 = smov 0   ;;  %s1042_s23 = smov 0  }
   0x6 LB: > { %s1055_s4 = sadd.s32 4294967295, %s961_s23   ;;  %s1058_s24 = sadd.s32 1, %s961_s23   ;;  %s961_s23 = sphi %s1042_s23, %s1228_s23   ;;  %s957_s22 = sphi %s1040_s22, %s1227_s22   ;;  %s953_s21 = sphi %s1038_s21, %s1226_s21   ;;  %s949_s20 = sphi %s1036_s20, %s1225_s20  }
   0x7   : > { %s24_s25 = ssub.s32 %s961_s23, %s1058_s24  ;;  %s27_s26 = sadd.s32 1, %s957_s22 }
   0x8   : > { %p25_p0 = scmp.eq.s32.totalorder %s24_s25, 0  ;;  %p34_p1 = scmp.ne.s32.totalorder %s957_s22, %s953_s21 }
   0x9   : > { %p35_p2 = scmp.eq.s32.totalorder %s961_s23, 0  ;;  %p40_p3 = scmp.ne.s32.totalorder %s953_s21, %s949_s20 }
   0xa   : > { %s1068_s27 = scalar_select %p25_p0, %s957_s22, %s27_s26  }
   0xb   : > { %p1070_p4 = por %p35_p2, %p34_p1  ;;  %p41_p5 = scmp.eq.s32.totalorder %s1055_s4, 0 }
   0xc   : > { %p148_p6 = scmp.eq.s32.totalorder %s1055_s4, 1  ;;  %p663_p7 = scmp.ge.s32.totalorder %s961_s23, 1 }
   0xd   : > { %p1079_p8 = por %p41_p5, %p40_p3  ;;  %p161_p9 = scmp.lt.s32.totalorder %s961_s23, 3 }
   0xe   : > { %p1084_p10 = por %p148_p6, %p34_p1  ;;  %s995_s7 = smov [#allocation5]  }
   0xf   : > { %s1220_s29 = scalar_select %p1079_p8, 1, 0 }
  0x10   : > { %s1221_s30 = scalar_select %p1084_p10, 1, 0 }
  0x11   : > { %p1088_p11 = pnand %p663_p7, %p161_p9  ;;  %s173_s8 = sshll.u32 %s995_s7, 4  ;;  %s174_s8 = int_to_ptr.vmem [resolvable:$true] %s173_s8 }
  0x12   : > { %s850_s9 = scalar_lea.vmem %s174_s8, 1024  ;;  %p858_p6 = scmp.lt.s32.totalorder %s174_s8, %s174_s8 }
  0x13   : > { %p714_p12 = pneg %p1088_p11  ;;  %p851_p2 = scmp.ne.s32.totalorder %s174_s8, %s850_s9 }
  0x14   : > { %p859_p8 = scmp.lt.s32.totalorder %s850_s9, %s850_s9 }
  0x15   : > { %p715_p13 = pnand %p714_p12, %p41_p5 }
  0x16   : > { %p860_p10 = por %p859_p8, %p858_p6 }
  0x17   : > { %p841_p0 = pneg %p715_p13 }
  0x19   : > { %p853_p3 = pnand %p851_p2, %p841_p0 }
  0x1b   : > { %p854_p1 = pneg %p853_p3 }
  0x1d   : > { %p861_p7 = pnand %p860_p10, %p854_p1 }
  0x1f   : > { %864 = shalt.err (!%p861_p7)
}
  0x20   : > { %s996_s10 = smov 256   ;;  %s997_s11 = smov 16  }
  0x21   : > { %717 = dma.hbm_to_vmem [thread:$0]  (!%p715_p13), %s1213_s1, 1024, %s174_s8, [#allocation6], %s996_s10, %s996_s10, %s997_s11  }
  0x22   : > { %p665_p9 = scmp.ge.s32.totalorder %s961_s23, 2 }
  0x24   : > { %192 = sbr.rel (%p665_p9) target bundleno = 73 (0x49), region = 32 }
  0x29   : > { %195 = sbr.rel (!%p1070_p4) target bundleno = 73 (0x49), region = 36  ;;  %s196_s14 = sand.u32 (%p1070_p4), 1, %s957_s22  }
  0x2a   : > { %s667_s15 = sshll.u32 (%p1070_p4), %s961_s23, 1  ;;  %s666_s16 = sshll.u32 (%p1070_p4), %s196_s14, 4 }
  0x2b   : > { %s202_s17 = ssub.s32 (%p1070_p4), 3, %s667_s15  ;;  %s1107_s20 = scalar_lea.sflag (%p1070_p4), [#allocation4], %s196_s14 }
  0x2c   : > { %p203_p8 = scmp.lt.s32.totalorder (%p1070_p4), %s202_s17, 2  ;;  %s200_s25 = scalar_lea.vmem (%p1070_p4), [#allocation3], %s666_s16 }
  0x2e   : > { %s1230_s17 = smov (!%p203_p8, %s202_s17), 2 }
  0x2f   : > { %s1104_s18 = sshll.u32 %s1230_s17, 7 }
  0x30   : > { %s207_s19 = ssub.s32 256, %s1104_s18 }
  0x31   : > { %208 = vsyncadd %s1107_s20, %s207_s19  ;;  %p669_p4 = scmp.ne.s32.totalorder %s1104_s18, 0  ;;  %s697_s26 = sshll.u32 %s961_s23, 8 }
  0x32   : > { %s1115_s8 = scalar_lea.hbm %s1212_s0, %s697_s26  ;;  %s213_s9 = sshll.u32 %s200_s25, 4  ;;  %s1117_s9 = int_to_ptr.vmem [resolvable:$true] %s213_s9 }
  0x33   : > { %s865_s10 = scalar_lea.hbm %s1115_s8, %s1104_s18  ;;  %s869_s23 = scalar_lea.hbm %s1212_s0, 384 }
  0x34   : > { %p866_p10 = scmp.ne.s32.totalorder %s1115_s8, %s865_s10  ;;  %p870_p0 = scmp.lt.s32.totalorder %s1115_s8, %s1212_s0 }
  0x35   : > { %p871_p2 = scmp.lt.s32.totalorder %s869_s23, %s865_s10 }
  0x36   : > { %p867_p12 = pnand %p866_p10, %p669_p4 }
  0x37   : > { %p872_p3 = por %p871_p2, %p870_p0 }
  0x38   : > { %p868_p13 = pneg %p867_p12 }
  0x3a   : > { %p873_p1 = pnand %p872_p3, %p868_p13 }
  0x3c   : > { %876 = shalt.err (!%p873_p1)
}
  0x3d   : > { %s877_s15 = scalar_lea.vmem %s1117_s9, %s1104_s18  ;;  %s998_s16 = smov [#allocation3]  }
  0x3e   : > { %p878_p6 = scmp.ne.s32.totalorder %s1117_s9, %s877_s15  ;;  %s881_s17 = sshll.u32 %s998_s16, 4  ;;  %s882_s17 = int_to_ptr.vmem [resolvable:$false] %s881_s17 }
  0x3f   : > { %s883_s19 = scalar_lea.vmem %s882_s17, 512  ;;  %p884_p8 = scmp.lt.s32.totalorder %s1117_s9, %s882_s17 }
  0x40   : > { %p879_p7 = pnand %p878_p6, %p669_p4  ;;  %p885_p10 = scmp.lt.s32.totalorder %s883_s19, %s877_s15 }
  0x42   : > { %p880_p9 = pneg %p879_p7  ;;  %p886_p12 = por %p885_p10, %p884_p8 }
  0x44   : > { %p887_p0 = pnand %p886_p12, %p880_p9 }
  0x46   : > { %890 = shalt.err (!%p887_p0)
}
  0x47   : > { %s999_s25 = smov 128   ;;  %s1000_s26 = smov 8  }
  0x48   : > { %219 = dma.hbm_to_vmem [thread:$0]  (%p669_p4), %s1115_s8, %s1104_s18, %s1117_s9, %s1107_s20, %s999_s25, %s999_s25, %s1000_s26  }
  0x49 PF: > { %225 = sbr.rel (%p1088_p11) target bundleno = 623 (0x26f), region = 40  ;;  %s227_s28 = sand.u32 (!%p1088_p11), 1, %s953_s21  }
  0x4a   : > { %s1146_s7 = sshll.u32 (!%p1088_p11), %s227_s28, 4  ;;  %s228_s10 = scalar_lea.sflag (!%p1088_p11), [#allocation4], %s227_s28 }
  0x4b   : > { %s231_s11 = scalar_lea.vmem (!%p1088_p11), [#allocation3], %s1146_s7  ;;  %p1223_p13 = scmp.ne.s32.totalorder (!%p1088_p11), %s1220_s29, 0 }
  0x4e   : > { %940 = dma.done.wait (%p1223_p13), %s228_s10, 256  }
  0x4f   : > { %942 = vsyncadd (%p1223_p13), %s228_s10, 4294967040 }
  0x50   : > { %944 = dma.done.wait (%p41_p5), [#allocation6], 1024  }
  0x51   : > { %946 = vsyncadd (%p41_p5), [#allocation6], 4294966272  ;;  %v1001_v0 = vmov 0.0   ;;  %v280_v1 = vld [vmem:[#allocation5 + $0x38] sm:$0xff]  ;;  %v279_v2 = vld [vmem:[#allocation5 + $0x30] sm:$0xff]  ;;  %vm293_vm0 = vcmask 261120   ;;  %v283_v11 = vlaneseq }
  0x52   : > { %364 = vmatprep.mubr.f32.mxu0 %v1001_v0  ;;  %370 = vmatprep.mubr.f32.mxu1 %v1001_v0  ;;  %v278_v3 = vld [vmem:[#allocation5 + $0x28] sm:$0xff]  ;;  %v277_v4 = vld [vmem:[#allocation5 + $0x20] sm:$0xff]  ;;  %v276_v5 = vld [vmem:[#allocation5 + $0x18] sm:$0xff]  ;;  %s1002_s18 = smov 64   ;;  %s414_s9 = sld [smem:[#allocation2]]  ;;  %vm418_vm1 = vcmask 7168  }
  0x53   : > { %324 = vmatprep.subr.mxu0 %v280_v1  ;;  %701 = vmatprep.subr.mxu1 %v280_v1  ;;  %v275_v6 = vld [vmem:[#allocation5 + $0x10] sm:$0xff]  ;;  %v274_v7 = vld [vmem:[#allocation5 + $0x8] sm:$0xff]  ;;  %v273_v8 = vld [vmem:[#allocation5] sm:$0xff]  ;;  %v284_v12 = vshrl.u32 %v283_v11, 7  ;;  %s1164_s12 = scalar_lea.vmem [#allocation7], %s1146_s7   ;;  %p1224_p5 = scmp.ne.s32.totalorder %s1221_s30, 0 }
  0x54   : > { %325 = vmatpush1.msra.mxu0 %v279_v2  ;;  %705 = vmatpush1.msra.mxu1 %v279_v2  ;;  %v271_v9 = vld [vmem:[%s231_s11] sm:$0xff]  ;;  %v272_v10 = vld [vmem:[%s231_s11 + $0x8] sm:$0xff]  ;;  %s681_s23 = sshll.u32 (%p1224_p5), %s1055_s4, 1  ;;  %s698_s13 = sshll.u32 (%p1224_p5), %s1055_s4, 4 }
  0x55   : > { %326 = vmatprep.subr.mxu0 %v278_v3  ;;  %702 = vmatprep.subr.mxu1 %v278_v3  ;;  %v285_v13 = vsub.s32 0, %v284_v12  ;;  %v281_v14 = vld [vmem:[%s1214_s2] sm:$0x3]  ;;  %v289_v30 = vsub.s32 1, %v284_v12  ;;  %s429_s14 = ssub.s32 (%p1224_p5), 3, %s681_s23  ;;  %s1175_s17 = scalar_lea.vmem (%p1224_p5), %s1217_s5, %s698_s13  }
  0x56   : > { %327 = vmatpush1.msra.mxu0 %v277_v4  ;;  %706 = vmatpush1.msra.mxu1 %v277_v4  ;;  %v679_v42 = vld [vmem:[%s1215_s3] ss:$0 sm:$0xff]  ;;  %p430_p11 = scmp.lt.s32.totalorder (%p1224_p5), %s429_s14, 2 }
  0x57   : > { %328 = vmatprep.subr.mxu0 %v276_v5  ;;  %703 = vmatprep.subr.mxu1 %v276_v5  ;;  %v286_v15 = vrot.slane %v281_v14, %v285_v13  ;;  %v290_v31 = vrot.slane %v281_v14, %v289_v30 }
  0x58   : > { %329 = vmatpush1.msra.mxu0 %v275_v6  ;;  %707 = vmatpush1.msra.mxu1 %v275_v6  ;;  %v415_v49 = vstv %s414_s9 }
  0x59   : > { %330 = vmatprep.subr.mxu0 %v274_v7  ;;  %704 = vmatprep.subr.mxu1 %v274_v7 }
  0x5a   : > { %331 = vmatpush1.msra.mxu0 %v273_v8  ;;  %708 = vmatpush1.msra.mxu1 %v273_v8 }
  0x5b   : > { %677 = vmatmul.mubr.msk.f32.vlgmr.msra.gmra.mxu0 %vm293_vm0, %v271_v9  ;;  %678 = vmatmul.mubr.msk.f32.vlgmr.msra.gmra.mxu1 %vm293_vm0, %v272_v10 }
 0x11b   : > { %v366_v16 = vpop.f32.mrf.mxu0  ;;  %v372_v17 = vpop.f32.mrf.mxu1 }
 0x11c   : > { %v367_v18 = vadd.f32 %v366_v16, %v286_v15  ;;  %v373_v19 = vadd.f32 %v372_v17, %v286_v15 }
 0x11d   : > { %v368_v32 = vpop.f32.mrf.mxu0  ;;  %v374_v34 = vpop.f32.mrf.mxu1 }
 0x11e   : > { %v377_v20 = vsub.f32 0.0, %v367_v18  ;;  %v378_v21 = vsub.f32 0.0, %v373_v19  ;;  %v369_v33 = vadd.f32 %v368_v32, %v290_v31  ;;  %v375_v35 = vadd.f32 %v374_v34, %v290_v31 }
 0x120   : > { %v379_v22 = vmul.f32 1.442695, %v377_v20  ;;  %v381_v23 = vmul.f32 1.442695, %v378_v21 }
 0x122   : > { %823 = vpow2.f32 %v379_v22 }
 0x123   : > { %825 = vpow2.f32 %v381_v23 }
 0x12f   : > { %v824_v24 = vpop.eup %823 }
 0x130   : > { %v826_v25 = vpop.eup %825  ;;  %v383_v26 = vadd.f32 1.0, %v824_v24 }
 0x131   : > { %v384_v27 = vadd.f32 1.0, %v826_v25 }
 0x132   : > { %827 = vrcp.f32 %v383_v26 }
 0x133   : > { %829 = vrcp.f32 %v384_v27 }
 0x134   : > { %831 = vtanh.f32 %v369_v33 }
 0x135   : > { %833 = vtanh.f32 %v375_v35 }
 0x13f   : > { %v828_v28 = vpop.eup %827 }
 0x140   : > { %393 = vrot.lane.b32.xlu0 %v828_v28, %s1002_s18  ;;  %v830_v29 = vpop.eup %829 }
 0x141   : > { %v832_v36 = vpop.eup %831 }
 0x142   : > { %v391_v37 = vmul.f32 %v832_v36, %v828_v28  ;;  %v834_v38 = vpop.eup %833 }
 0x143   : > { %v392_v39 = vmul.f32 %v834_v38, %v830_v29 }
 0x144   : > { %395 = vrot.lane.b32.xlu0 %v830_v29, %s1002_s18  ;;  %835 = vtanh.f32 %v391_v37 }
 0x145   : > { %837 = vtanh.f32 %v392_v39 }
 0x151   : > { %v836_v40 = vpop.eup %835 }
 0x152   : > { %v838_v45 = vpop.eup %837 }
 0x1b2   : > { %v394_v41 = vpop.permute.xlu0 %393 }
 0x1b3   : > { %v399_v43 = vmul.f32 %v836_v40, %v394_v41 }
 0x1b5   : > { %v408_v44 = vmul.f32 %v679_v42, %v399_v43 }
 0x1b6   : > { %v396_v46 = vpop.permute.xlu0 %395 }
 0x1b7   : > { %v400_v47 = vmul.f32 %v838_v45, %v396_v46  ;;  %410 = vadd.xlane.f32.xlu1 %v408_v44 }
 0x1b9   : > { %v409_v48 = vmul.f32 %v679_v42, %v400_v47 }
 0x1bb   : > { %412 = vadd.xlane.f32.xlu1 %v409_v48 }
 0x240   : > { %v411_v50 = vpop.xlane.xlu1 %410 }
 0x241   : > { %v416_v51 = vadd.f32 %v415_v49, %v411_v50 }
 0x243   : > { %419 = vst.msk [vmem:[%s1164_s12] sm:$0xff] %vm418_vm1, %v416_v51  ;;  %427 = sbr.rel (!%p1224_p5) target bundleno = 623 (0x26f), region = 52 }
 0x244   : > { %v413_v52 = vpop.xlane.xlu1 %412 }
 0x245   : > { %v417_v53 = vadd.f32 %v415_v49, %v413_v52 }
 0x247   : > { %420 = vst.msk [vmem:[%s1164_s12 + $0x8] sm:$0xff] %vm418_vm1, %v417_v53 }
 0x248   : > { %s1232_s14 = smov (!%p430_p11, %s429_s14), 2 }
 0x249   : > { %s682_s19 = sshll.u32 %s1232_s14, 7 }
 0x24a   : > { %p685_p4 = scmp.eq.s32.totalorder %s682_s19, 0 }
 0x24b   : > { %s1181_s30 = sshrl.u32 (!%p685_p4), %s1232_s14, 1 }
 0x24c   : > { %438 = sbr.rel (%p685_p4) target bundleno = 623 (0x26f), region = 56  ;;  %p686_p2 = scmp.le.s32.totalorder (!%p685_p4), %s1181_s30, 0 }
 0x251   : > { %606 = sbr.rel (%p686_p2) target bundleno = 606 (0x25e), region = 138  ;;  %s963_s4 = smov (!%p686_p2), %s1175_s17  }
 0x252   : > { %s967_s25 = smov (!%p686_p2), %s1164_s12   ;;  %s971_s26 = smov (!%p686_p2), 0  }
 0x253   : > { %s975_s28 = smov (!%p686_p2), 0  }
 0x256 LB: >> { %v503_v54 = vld [vmem:[%s969_s25] sm:$0xff]  ;;  %v505_v55 = vld [vmem:[%s969_s25 + $0x8] sm:$0xff]  ;;  %s507_s7 = sadd.s32 1, %s973_s26  ;;  %s497_s28 = sadd.s32 1, %s977_s28   ;;  %s977_s28 = sphi %s975_s28, %s497_s28   ;;  %s973_s26 = sphi %s971_s26, %s972_s26   ;;  %s969_s25 = sphi %s967_s25, %s512_s25   ;;  %s965_s4 = sphi %s963_s4, %s513_s4  }
 0x257   : >> { %504 = vst [vmem:[%s965_s4] sm:$0xff] %v503_v54  ;;  %506 = vst [vmem:[%s965_s4 + $0x8] sm:$0xff] %v505_v55  ;;  %p508_p3 = scmp.ge.s32.totalorder %s507_s7, %s1181_s30  ;;  %p496_p1 = scmp.ge.s32.totalorder %s497_s28, %s1181_s30 }
 0x259   : >> { %s1234_s7 = smov (%p508_p3, %s507_s7), 0  ;;  %499 = sbr.rel (!%p496_p1) target bundleno = 598 (0x256), region = 144 }
 0x25a   : >> { %s687_s10 = sshll.u32 %s1234_s7, 4  ;;  %s972_s26 = smov %s1234_s7  }
 0x25b   : >> { %s512_s25 = scalar_lea.vmem %s1164_s12, %s687_s10 [#allocation7]   ;;  %s513_s4 = scalar_lea.vmem %s1175_s17, %s687_s10  }
 0x25e PF: > { %s1191_s11 = sand.u32 1, %s1232_s14   ;;  %s699_s29 = sshll.u32 %s1181_s30, 4 }
 0x25f   : > { %s518_s6 = scalar_lea.vmem %s1164_s12, %s699_s29 [#allocation7]   ;;  %s520_s18 = scalar_lea.vmem %s1175_s17, %s699_s29  }
 0x260   : > { %p692_p6 = scmp.le.s32.totalorder %s1191_s11, 0 }
 0x261   : > { %s979_s20 = smov (!%p692_p6), %s520_s18   ;;  %s983_s8 = smov (!%p692_p6), %s518_s6  }
 0x262   : > { %620 = sbr.rel (%p692_p6) target bundleno = 623 (0x26f), region = 149  ;;  %s987_s9 = smov (!%p692_p6), 0  }
 0x263   : > { %s991_s23 = smov (!%p692_p6), 0  }
 0x267 LB: >> { %v530_v56 = vld [vmem:[%s985_s8] sm:$0xff]  ;;  %s532_s13 = sadd.s32 1, %s989_s9  ;;  %s524_s23 = sadd.s32 1, %s993_s23   ;;  %s993_s23 = sphi %s991_s23, %s524_s23   ;;  %s989_s9 = sphi %s987_s9, %s988_s9   ;;  %s985_s8 = sphi %s983_s8, %s537_s8   ;;  %s981_s20 = sphi %s979_s20, %s538_s20  }
 0x268   : >> { %531 = vst [vmem:[%s981_s20] sm:$0xff] %v530_v56  ;;  %p533_p7 = scmp.ge.s32.totalorder %s532_s13, %s1191_s11  ;;  %p523_p9 = scmp.ge.s32.totalorder %s524_s23, %s1191_s11 }
 0x26a   : >> { %s1236_s13 = smov (%p533_p7, %s532_s13), 0  ;;  %526 = sbr.rel (!%p523_p9) target bundleno = 615 (0x267), region = 155 }
 0x26b   : >> { %s693_s12 = sshll.u32 %s1236_s13, 3  ;;  %s988_s9 = smov %s1236_s13  }
 0x26c   : >> { %s537_s8 = scalar_lea.vmem %s518_s6, %s693_s12 [#allocation7]   ;;  %s538_s20 = scalar_lea.vmem %s520_s18, %s693_s12  }
 0x26f PF: > { %p17_p8 = scmp.ge.s32.totalorder %s1058_s24, 4   ;;  %s1225_s20 = smov %s953_s21 }
 0x270   : > { %s1226_s21 = smov %s957_s22  ;;  %s1227_s22 = smov %s1068_s27 }
 0x271   : > { %s1228_s23 = smov %s1058_s24  ;;  %19 = sbr.rel (!%p17_p8) target bundleno = 6 (0x6), region = 166 }
 0x276   :  { %554 = vsyncpa [#allocation4], 1 }
 0x277   :  { %556 = vsyncpa [#allocation4 + $0x1], 1 }
 0x278   :  { %557 = vsyncpa [#allocation6], 1 }

</bundles_post_ra>
